<compile_context>
chip_gen: v7x
topology: tpu7x:2x2x1
jax: 0.10.0
libtpu: 0.0.40
codegen_flags: <defaults>
</compile_context>

<pallas_src>
import math
import numpy as np
import jax
import jax.numpy as jnp
from jax import lax
from jax.experimental import pallas as pl
from jax.experimental.pallas import tpu as pltpu


# ---------------------------------------------------------------------------
# Kernel: one (batch block, T chunk) grid cell.
#   x_ref    : (Tc, BB, E)  time-major embedding chunk
#   last_ref : (BB, 1)      int32 per-row global step whose h is "final" (-1 = never)
#   wih_ref  : (E, 4H)      input->gates weights (g columns pre-scaled by 2)
#   whh_ref  : (H, 4H)      hidden->gates weights (g columns pre-scaled by 2)
#   b_ref    : (1, 4H)      LSTM bias (g columns pre-scaled by 2)
#   wo_ref   : (H, O), bo_ref : (1, O)  output projection
#   o_ref    : (BB, O)      logits (written only on the last chunk)
#   scratch  : xp (Tc*BB, 4H), h/c/final (BB, H) carried across chunks
# ---------------------------------------------------------------------------
def lstm_chunk_kernel(x_ref, last_ref, wih_ref, whh_ref, b_ref, wo_ref, bo_ref,
                      o_ref, xp_scr, h_scr, c_scr, f_scr):
    Tc, BB, E = x_ref.shape
    H4 = whh_ref.shape[1]
    H = H4 // 4
    ci = pl.program_id(1)
    n_chunks = pl.num_programs(1)

    # Initialize the carried state at the first chunk of each batch block.
    @pl.when(ci == 0)
    def _():
        h_scr[...] = jnp.zeros_like(h_scr)
        c_scr[...] = jnp.zeros_like(c_scr)
        f_scr[...] = jnp.zeros_like(f_scr)

    # --- Per-chunk input projection: one large MXU matmul off the h chain. ---
    # Collapse leading dims (tile-aligned: BB is a multiple of 8, E unchanged).
    x_flat = x_ref[...].reshape(Tc * BB, E)
    xp_scr[...] = (jnp.dot(x_flat, wih_ref[...],
                           preferred_element_type=jnp.float32) + b_ref[...])

    w_hh = whh_ref[...]

    # Hoisted gate-lane constants: with g columns of W/b pre-scaled by 2,
    # tanh(x) = 2*sigmoid(2x) - 1, so one sigmoid pass + one VPU fma suffices.
    # TODO(synk): for production sizes pad H to a multiple of 128 so the four
    # gate slices land on vreg lane boundaries (here H=32 -> in-vreg selects).
    lane = lax.broadcasted_iota(jnp.int32, (BB, H4), 1)
    g_mask = (lane >= 2 * H) & (lane < 3 * H)
    g_scale = jnp.where(g_mask, 2.0, 1.0)
    g_shift = jnp.where(g_mask, -1.0, 0.0)

    # Per-row snapshot step rebased to this chunk, broadcast once (not per step).
    last_local = jnp.broadcast_to(last_ref[...], (BB, H)) - ci * Tc

    def step(t, carry):
        h, c, final = carry
        row0 = pl.multiple_of(t * BB, 8)
        gates = xp_scr[pl.ds(row0, BB), :] + jnp.dot(
            h, w_hh, preferred_element_type=jnp.float32)
        s = jax.nn.sigmoid(gates)              # single EUP pass over 4H lanes
        acts = s * g_scale + g_shift           # fix up tanh (g) lanes on VPU
        i_g = acts[:, 0 * H:1 * H]
        f_g = acts[:, 1 * H:2 * H]
        g_g = acts[:, 2 * H:3 * H]
        o_g = acts[:, 3 * H:4 * H]
        c_new = f_g * c + i_g * g_g
        h_new = o_g * jnp.tanh(c_new)
        final_new = jnp.where(last_local == t, h_new, final)
        return h_new, c_new, final_new

    carry0 = (h_scr[...], c_scr[...], f_scr[...])
    h, c, final = lax.fori_loop(0, Tc, step, carry0, unroll=4)
    h_scr[...] = h
    c_scr[...] = c
    f_scr[...] = final

    # Fused output-projection epilogue at the last chunk.
    @pl.when(ci == n_chunks - 1)
    def _():
        # TODO(synk): nn.Dropout(p=0.5) before the Linear is identity (eval).
        o_ref[...] = (jnp.dot(final, wo_ref[...],
                              preferred_element_type=jnp.float32) + bo_ref[...])


# ---------------------------------------------------------------------------
# Forward pass wrapper.
# TODO(synk): the original TreeLSTM composes nodes with data-dependent
# shift/reduce `transitions` (and TreeLSTMCell.forward is NotImplemented in the
# spec); this keeps the previously-established flat sequential-LSTM semantics.
# TODO(synk): on v6e/v7x the x slab and weights could be cast to bf16 (f32
# accumulation via preferred_element_type); kept f32 here for exact checking.
# ---------------------------------------------------------------------------
def treelstm_classifier_forward(x_tokens, params, *, t_chunk=4, batch_block=8):
    """x_tokens: (B, T) int32, pad token id == 1. Returns (B, O) logits."""
    emb_table = params["embedding"]
    w_ih, w_hh, b_lstm = params["w_ih"], params["w_hh"], params["b_lstm"]
    w_out, b_out = params["w_out"], params["b_out"]

    B, T = x_tokens.shape
    E = w_ih.shape[0]
    H = w_hh.shape[0]
    H4 = w_ih.shape[1]
    O = w_out.shape[1]

    BB = batch_block                              # one full 8-sublane group
    Bp = ((B + BB - 1) // BB) * BB
    Tc = min(t_chunk, T)
    T_pad = ((T + Tc - 1) // Tc) * Tc

    # Embedding gather directly in time-major order (padding_idx=1 row is 0),
    # then pad batch to Bp and time to T_pad with zeros.
    x_emb_tbe = emb_table[x_tokens.T]             # (T, B, E)
    x_emb_tbe = jnp.pad(x_emb_tbe, ((0, T_pad - T), (0, Bp - B), (0, 0)))

    # Pre-scale the g-gate columns by 2 (single-sigmoid gate trick).
    col = jnp.arange(H4)
    col_scale = jnp.where((col >= 2 * H) & (col < 3 * H), 2.0, 1.0)[None, :]
    w_ih_s = (w_ih * col_scale).astype(jnp.float32)
    w_hh_s = (w_hh * col_scale).astype(jnp.float32)
    b_s = (b_lstm * col_scale).astype(jnp.float32)

    # Per-row step index of the "final" hidden state (matches reference:
    # B==1 takes the last step unconditionally; B>1 takes step lengths-1).
    # TODO(synk): rows that are ALL padding get last_idx=-1 -> zero final state
    # (the reference's flat gather wraps to garbage for that edge case).
    if B == 1:
        last_idx = jnp.full((B, 1), T - 1, dtype=jnp.int32)
    else:
        lengths = jnp.sum(x_tokens != 1, axis=1).astype(jnp.int32)
        last_idx = (lengths - 1)[:, None]
    last_idx = jnp.pad(last_idx, ((0, Bp - B), (0, 0)), constant_values=-1)

    n_bblocks = Bp // BB
    n_chunks = T_pad // Tc

    # Scoped-VMEM budget sized from the actual resident buffers (+ headroom).
    est = 4 * (2 * Tc * BB * E                    # double-buffered x chunk
               + 2 * BB                           # last_idx block
               + 2 * (E * H4 + H * H4 + H4 + H * O + O)   # weights/biases
               + Tc * BB * H4                     # xp scratch
               + 3 * BB * H                       # h / c / final scratch
               + 2 * BB * O)                      # output block
    vmem_limit = int(min(max(4 * est, 8 << 20), 100 << 20))

    logits = pl.pallas_call(
        lstm_chunk_kernel,
        out_shape=jax.ShapeDtypeStruct((Bp, O), jnp.float32),
        grid=(n_bblocks, n_chunks),
        in_specs=[
            pl.BlockSpec((Tc, BB, E), lambda bi, ci: (ci, bi, 0)),
            pl.BlockSpec((BB, 1), lambda bi, ci: (bi, 0)),
            pl.BlockSpec((E, H4), lambda bi, ci: (0, 0)),
            pl.BlockSpec((H, H4), lambda bi, ci: (0, 0)),
            pl.BlockSpec((1, H4), lambda bi, ci: (0, 0)),
            pl.BlockSpec((H, O), lambda bi, ci: (0, 0)),
            pl.BlockSpec((1, O), lambda bi, ci: (0, 0)),
        ],
        out_specs=pl.BlockSpec((BB, O), lambda bi, ci: (bi, 0)),
        scratch_shapes=[
            pltpu.VMEM((Tc * BB, H4), jnp.float32),   # hoisted x projection
            pltpu.VMEM((BB, H), jnp.float32),         # h (carried over chunks)
            pltpu.VMEM((BB, H), jnp.float32),         # c
            pltpu.VMEM((BB, H), jnp.float32),         # final-h snapshot
        ],
        compiler_params=pltpu.CompilerParams(
            dimension_semantics=("parallel", "arbitrary"),
            vmem_limit_bytes=vmem_limit),
    )(x_emb_tbe, last_idx, w_ih_s, w_hh_s, b_s,
      w_out.astype(jnp.float32), b_out[None, :].astype(jnp.float32))

    return logits[:B]


# ---------------------------------------------------------------------------
# Pure-JAX reference for the correctness check.
# ---------------------------------------------------------------------------
def reference_forward(x_tokens, params):
    emb_table = params["embedding"]
    w_ih, w_hh, b_lstm = params["w_ih"], params["w_hh"], params["b_lstm"]
    w_out, b_out = params["w_out"], params["b_out"]
    B, T = x_tokens.shape
    H = w_hh.shape[0]
    x_emb = emb_table[x_tokens]
    h = jnp.zeros((B, H), jnp.float32)
    c = jnp.zeros((B, H), jnp.float32)
    hs = []
    for t in range(T):
        gates = x_emb[:, t] @ w_ih + h @ w_hh + b_lstm
        i_g = jax.nn.sigmoid(gates[:, 0 * H:1 * H])
        f_g = jax.nn.sigmoid(gates[:, 1 * H:2 * H])
        g_g = jnp.tanh(gates[:, 2 * H:3 * H])
        o_g = jax.nn.sigmoid(gates[:, 3 * H:4 * H])
        c = f_g * c + i_g * g_g
        h = o_g * jnp.tanh(c)
        hs.append(h)
    outputs = jnp.stack(hs, axis=1)                      # (B, T, H)
    if B == 1:
        final = h
    else:
        outputs = jnp.where((x_tokens == 1)[:, :, None], 0.0, outputs)
        lengths = jnp.sum(x_tokens != 1, axis=1)
        indexes = lengths - 1 + jnp.arange(B, dtype=lengths.dtype) * T
        final = outputs.reshape(-1, H)[indexes]
    return final @ w_out + b_out[None, :]


if __name__ == "__main__":
    VOCAB, E, H, O = 20, 16, 32, 2
    B, T = 2, 8

    key = jax.random.PRNGKey(0)
    k_emb, k_ih, k_hh, k_b, k_wo, k_bo, k_x = jax.random.split(key, 7)

    stdv = 1.0 / math.sqrt(H)
    emb_table = jax.random.normal(k_emb, (VOCAB, E), jnp.float32)
    emb_table = emb_table.at[1].set(0.0)                 # padding_idx=1 row zero

    params = {
        "embedding": emb_table,
        # Stored transposed relative to PyTorch ((4H,E)->(E,4H)) for x @ W.
        "w_ih": jax.random.uniform(k_ih, (E, 4 * H), jnp.float32, -stdv, stdv),
        "w_hh": jax.random.uniform(k_hh, (H, 4 * H), jnp.float32, -stdv, stdv),
        "b_lstm": jax.random.uniform(k_b, (1, 4 * H), jnp.float32, -stdv, stdv),
        "w_out": jax.random.uniform(k_wo, (H, O), jnp.float32, -stdv, stdv),
        "b_out": jax.random.uniform(k_bo, (O,), jnp.float32, -stdv, stdv),
    }

    # Token ids in [2, VOCAB); pad (=1) at the tail of the second sequence.
    x_tokens = jax.random.randint(k_x, (B, T), 2, VOCAB, dtype=jnp.int32)
    x_tokens = x_tokens.at[1, -3:].set(1)

    forward = jax.jit(treelstm_classifier_forward)
    logits = forward(x_tokens, params)
    logits = jax.block_until_ready(logits)

    ref = reference_forward(x_tokens, params)
    np.testing.assert_allclose(np.asarray(logits), np.asarray(ref),
                               rtol=1e-4, atol=1e-4)
    print("KERNEL_OK")
</pallas_src>

<mosaic_0001>
module attributes {stable_mosaic.version = 11 : i64} {
  func.func @lstm_chunk_kernel(%arg0: i32, %arg1: i32, %arg2: memref<4x8x16xf32, #tpu.memory_space<vmem>>, %arg3: memref<8x1xi32, #tpu.memory_space<vmem>>, %arg4: memref<16x128xf32, #tpu.memory_space<vmem>>, %arg5: memref<32x128xf32, #tpu.memory_space<vmem>>, %arg6: memref<1x128xf32, #tpu.memory_space<vmem>>, %arg7: memref<32x2xf32, #tpu.memory_space<vmem>>, %arg8: memref<1x2xf32, #tpu.memory_space<vmem>>, %arg9: memref<8x2xf32, #tpu.memory_space<vmem>>, %arg10: memref<32x128xf32, #tpu.memory_space<vmem>>, %arg11: memref<8x32xf32, #tpu.memory_space<vmem>>, %arg12: memref<8x32xf32, #tpu.memory_space<vmem>>, %arg13: memref<8x32xf32, #tpu.memory_space<vmem>>) attributes {dimension_semantics = [#tpu.dimension_semantics<parallel>, #tpu.dimension_semantics<arbitrary>], iteration_bounds = array<i64: 1, 2>, scalar_prefetch = 0 : i64, scratch_operands = 4 : i64, tpu.core_type = #tpu.core_type<tc>, window_params = [{transform_indices = @transform_0, window_bounds = array<i64: 4, 8, 16>}, {transform_indices = @transform_1, window_bounds = array<i64: 8, 1>}, {pipeline_mode = #tpu.pipeline_mode<synchronous>, transform_indices = @transform_2, window_bounds = array<i64: 16, 128>}, {pipeline_mode = #tpu.pipeline_mode<synchronous>, transform_indices = @transform_3, window_bounds = array<i64: 32, 128>}, {pipeline_mode = #tpu.pipeline_mode<synchronous>, transform_indices = @transform_4, window_bounds = array<i64: 1, 128>}, {pipeline_mode = #tpu.pipeline_mode<synchronous>, transform_indices = @transform_5, window_bounds = array<i64: 32, 2>}, {pipeline_mode = #tpu.pipeline_mode<synchronous>, transform_indices = @transform_6, window_bounds = array<i64: 1, 2>}, {transform_indices = @transform_7, window_bounds = array<i64: 8, 2>}]} {
    %c0_i32 = arith.constant 0 : i32
    %0 = arith.cmpi eq, %arg1, %c0_i32 : i32
    %1 = arith.extui %0 : i1 to i32
    %c0_i32_0 = arith.constant 0 : i32
    %2 = arith.cmpi ne, %1, %c0_i32_0 : i32
    scf.if %2 {
      %cst_48 = arith.constant 0.000000e+00 : f32
      %139 = vector.broadcast %cst_48 : f32 to vector<8x32xf32>
      %c0_49 = arith.constant 0 : index
      %c0_50 = arith.constant 0 : index
      %140 = vector.load %arg11[%c0_49, %c0_50] : memref<8x32xf32, #tpu.memory_space<vmem>>, vector<8x32xf32>
      tpu.vector_store %arg11[%c0_49, %c0_50], %139 {strides = array<i32>} : memref<8x32xf32, #tpu.memory_space<vmem>>, vector<8x32xf32>,
      %cst_51 = arith.constant 0.000000e+00 : f32
      %141 = vector.broadcast %cst_51 : f32 to vector<8x32xf32>
      %c0_52 = arith.constant 0 : index
      %c0_53 = arith.constant 0 : index
      %142 = vector.load %arg12[%c0_52, %c0_53] : memref<8x32xf32, #tpu.memory_space<vmem>>, vector<8x32xf32>
      tpu.vector_store %arg12[%c0_52, %c0_53], %141 {strides = array<i32>} : memref<8x32xf32, #tpu.memory_space<vmem>>, vector<8x32xf32>,
      %cst_54 = arith.constant 0.000000e+00 : f32
      %143 = vector.broadcast %cst_54 : f32 to vector<8x32xf32>
      %c0_55 = arith.constant 0 : index
      %c0_56 = arith.constant 0 : index
      %144 = vector.load %arg13[%c0_55, %c0_56] : memref<8x32xf32, #tpu.memory_space<vmem>>, vector<8x32xf32>
      tpu.vector_store %arg13[%c0_55, %c0_56], %143 {strides = array<i32>} : memref<8x32xf32, #tpu.memory_space<vmem>>, vector<8x32xf32>,
    } else {
    }
    %c0 = arith.constant 0 : index
    %c0_1 = arith.constant 0 : index
    %c0_2 = arith.constant 0 : index
    %3 = vector.load %arg2[%c0, %c0_1, %c0_2] : memref<4x8x16xf32, #tpu.memory_space<vmem>>, vector<4x8x16xf32>
    %4 = vector.shape_cast %3 : vector<4x8x16xf32> to vector<32x16xf32>
    %c0_3 = arith.constant 0 : index
    %c0_4 = arith.constant 0 : index
    %5 = vector.load %arg4[%c0_3, %c0_4] : memref<16x128xf32, #tpu.memory_space<vmem>>, vector<16x128xf32>
    %cst = arith.constant dense<0.000000e+00> : vector<32x128xf32>
    %6 = tpu.matmul %4, %5, %cst {dimension_numbers = #tpu.dot_dimension_numbers<[1], [0], [0], [1], [0, 0, 1, 1], [], []>} : vector<32x16xf32>, vector<16x128xf32>, vector<32x128xf32> -> vector<32x128xf32>
    %c0_5 = arith.constant 0 : index
    %c0_6 = arith.constant 0 : index
    %7 = vector.load %arg6[%c0_5, %c0_6] : memref<1x128xf32, #tpu.memory_space<vmem>>, vector<1x128xf32>
    %8 = vector.broadcast %7 : vector<1x128xf32> to vector<32x128xf32>
    %9 = arith.addf %6, %8 : vector<32x128xf32>
    %c0_7 = arith.constant 0 : index
    %c0_8 = arith.constant 0 : index
    %10 = vector.load %arg10[%c0_7, %c0_8] : memref<32x128xf32, #tpu.memory_space<vmem>>, vector<32x128xf32>
    tpu.vector_store %arg10[%c0_7, %c0_8], %9 {strides = array<i32>} : memref<32x128xf32, #tpu.memory_space<vmem>>, vector<32x128xf32>,
    %c0_9 = arith.constant 0 : index
    %c0_10 = arith.constant 0 : index
    %11 = vector.load %arg5[%c0_9, %c0_10] : memref<32x128xf32, #tpu.memory_space<vmem>>, vector<32x128xf32>
    %12 = tpu.iota {dimensions = array<i32: 1>} : vector<8x128xi32>
    %c64_i32 = arith.constant 64 : i32
    %13 = vector.broadcast %c64_i32 : i32 to vector<8x128xi32>
    %14 = arith.cmpi sge, %12, %13 : vector<8x128xi32>
    %c96_i32 = arith.constant 96 : i32
    %15 = vector.broadcast %c96_i32 : i32 to vector<8x128xi32>
    %16 = arith.cmpi slt, %12, %15 : vector<8x128xi32>
    %17 = arith.andi %14, %16 : vector<8x128xi1>
    %cst_11 = arith.constant 2.000000e+00 : f32
    %cst_12 = arith.constant 1.000000e+00 : f32
    %18 = vector.broadcast %cst_11 : f32 to vector<8x128xf32>
    %19 = vector.broadcast %cst_12 : f32 to vector<8x128xf32>
    %20 = arith.select %17, %18, %19 : vector<8x128xi1>, vector<8x128xf32>
    %cst_13 = arith.constant -1.000000e+00 : f32
    %cst_14 = arith.constant 0.000000e+00 : f32
    %21 = vector.broadcast %cst_13 : f32 to vector<8x128xf32>
    %22 = vector.broadcast %cst_14 : f32 to vector<8x128xf32>
    %23 = arith.select %17, %21, %22 : vector<8x128xi1>, vector<8x128xf32>
    %c0_15 = arith.constant 0 : index
    %c0_16 = arith.constant 0 : index
    %24 = vector.load %arg3[%c0_15, %c0_16] : memref<8x1xi32, #tpu.memory_space<vmem>>, vector<8x1xi32>
    %25 = vector.shape_cast %24 : vector<8x1xi32> to vector<8x1xi32>
    %26 = vector.broadcast %25 : vector<8x1xi32> to vector<8x32xi32>
    %c4_i32 = arith.constant 4 : i32
    %27 = arith.muli %arg1, %c4_i32 : i32
    %28 = vector.broadcast %27 : i32 to vector<8x32xi32>
    %29 = arith.subi %26, %28 : vector<8x32xi32>
    %c0_17 = arith.constant 0 : index
    %c0_18 = arith.constant 0 : index
    %30 = vector.load %arg11[%c0_17, %c0_18] : memref<8x32xf32, #tpu.memory_space<vmem>>, vector<8x32xf32>
    %c0_19 = arith.constant 0 : index
    %c0_20 = arith.constant 0 : index
    %31 = vector.load %arg12[%c0_19, %c0_20] : memref<8x32xf32, #tpu.memory_space<vmem>>, vector<8x32xf32>
    %c0_21 = arith.constant 0 : index
    %c0_22 = arith.constant 0 : index
    %32 = vector.load %arg13[%c0_21, %c0_22] : memref<8x32xf32, #tpu.memory_space<vmem>>, vector<8x32xf32>
    %c0_i32_23 = arith.constant 0 : i32
    %c8_i32 = arith.constant 8 : i32
    %33 = arith.muli %c0_i32_23, %c8_i32 : i32
    %34 = tpu.assume_multiple %33, 8 : i32
    %35 = arith.index_cast %34 : i32 to index
    %c0_24 = arith.constant 0 : index
    %36 = vector.load %arg10[%35, %c0_24] : memref<32x128xf32, #tpu.memory_space<vmem>>, vector<8x128xf32>
    %cst_25 = arith.constant dense<0.000000e+00> : vector<8x128xf32>
    %37 = tpu.matmul %30, %11, %cst_25 {dimension_numbers = #tpu.dot_dimension_numbers<[1], [0], [0], [1], [0, 0, 1, 1], [], []>} : vector<8x32xf32>, vector<32x128xf32>, vector<8x128xf32> -> vector<8x128xf32>
    %38 = arith.addf %36, %37 : vector<8x128xf32>
    %39 = arith.negf %38 : vector<8x128xf32>
    %40 = math.exp %39 : vector<8x128xf32>
    %cst_26 = arith.constant 1.000000e+00 : f32
    %41 = vector.broadcast %cst_26 : f32 to vector<8x128xf32>
    %42 = arith.addf %41, %40 : vector<8x128xf32>
    %43 = arith.divf %41, %42 : vector<8x128xf32>
    %44 = arith.mulf %43, %20 : vector<8x128xf32>
    %45 = arith.addf %44, %23 : vector<8x128xf32>
    %46 = vector.extract_strided_slice %45 {offsets = [0, 0], sizes = [8, 32], strides = [1, 1]} : vector<8x128xf32> to vector<8x32xf32>
    %47 = vector.extract_strided_slice %45 {offsets = [0, 32], sizes = [8, 32], strides = [1, 1]} : vector<8x128xf32> to vector<8x32xf32>
    %48 = vector.extract_strided_slice %45 {offsets = [0, 64], sizes = [8, 32], strides = [1, 1]} : vector<8x128xf32> to vector<8x32xf32>
    %49 = vector.extract_strided_slice %45 {offsets = [0, 96], sizes = [8, 32], strides = [1, 1]} : vector<8x128xf32> to vector<8x32xf32>
    %50 = arith.mulf %47, %31 : vector<8x32xf32>
    %51 = arith.mulf %46, %48 : vector<8x32xf32>
    %52 = arith.addf %50, %51 : vector<8x32xf32>
    %53 = math.tanh %52 : vector<8x32xf32>
    %54 = arith.mulf %49, %53 : vector<8x32xf32>
    %55 = vector.broadcast %c0_i32_23 : i32 to vector<8x32xi32>
    %56 = arith.cmpi eq, %29, %55 : vector<8x32xi32>
    %57 = arith.select %56, %54, %32 : vector<8x32xi1>, vector<8x32xf32>
    %c1_i32 = arith.constant 1 : i32
    %c8_i32_27 = arith.constant 8 : i32
    %58 = arith.muli %c1_i32, %c8_i32_27 : i32
    %59 = tpu.assume_multiple %58, 8 : i32
    %60 = arith.index_cast %59 : i32 to index
    %c0_28 = arith.constant 0 : index
    %61 = vector.load %arg10[%60, %c0_28] : memref<32x128xf32, #tpu.memory_space<vmem>>, vector<8x128xf32>
    %cst_29 = arith.constant dense<0.000000e+00> : vector<8x128xf32>
    %62 = tpu.matmul %54, %11, %cst_29 {dimension_numbers = #tpu.dot_dimension_numbers<[1], [0], [0], [1], [0, 0, 1, 1], [], []>} : vector<8x32xf32>, vector<32x128xf32>, vector<8x128xf32> -> vector<8x128xf32>
    %63 = arith.addf %61, %62 : vector<8x128xf32>
    %64 = arith.negf %63 : vector<8x128xf32>
    %65 = math.exp %64 : vector<8x128xf32>
    %cst_30 = arith.constant 1.000000e+00 : f32
    %66 = vector.broadcast %cst_30 : f32 to vector<8x128xf32>
    %67 = arith.addf %66, %65 : vector<8x128xf32>
    %68 = arith.divf %66, %67 : vector<8x128xf32>
    %69 = arith.mulf %68, %20 : vector<8x128xf32>
    %70 = arith.addf %69, %23 : vector<8x128xf32>
    %71 = vector.extract_strided_slice %70 {offsets = [0, 0], sizes = [8, 32], strides = [1, 1]} : vector<8x128xf32> to vector<8x32xf32>
    %72 = vector.extract_strided_slice %70 {offsets = [0, 32], sizes = [8, 32], strides = [1, 1]} : vector<8x128xf32> to vector<8x32xf32>
    %73 = vector.extract_strided_slice %70 {offsets = [0, 64], sizes = [8, 32], strides = [1, 1]} : vector<8x128xf32> to vector<8x32xf32>
    %74 = vector.extract_strided_slice %70 {offsets = [0, 96], sizes = [8, 32], strides = [1, 1]} : vector<8x128xf32> to vector<8x32xf32>
    %75 = arith.mulf %72, %52 : vector<8x32xf32>
    %76 = arith.mulf %71, %73 : vector<8x32xf32>
    %77 = arith.addf %75, %76 : vector<8x32xf32>
    %78 = math.tanh %77 : vector<8x32xf32>
    %79 = arith.mulf %74, %78 : vector<8x32xf32>
    %80 = vector.broadcast %c1_i32 : i32 to vector<8x32xi32>
    %81 = arith.cmpi eq, %29, %80 : vector<8x32xi32>
    %82 = arith.select %81, %79, %57 : vector<8x32xi1>, vector<8x32xf32>
    %c2_i32 = arith.constant 2 : i32
    %c8_i32_31 = arith.constant 8 : i32
    %83 = arith.muli %c2_i32, %c8_i32_31 : i32
    %84 = tpu.assume_multiple %83, 8 : i32
    %85 = arith.index_cast %84 : i32 to index
    %c0_32 = arith.constant 0 : index
    %86 = vector.load %arg10[%85, %c0_32] : memref<32x128xf32, #tpu.memory_space<vmem>>, vector<8x128xf32>
    %cst_33 = arith.constant dense<0.000000e+00> : vector<8x128xf32>
    %87 = tpu.matmul %79, %11, %cst_33 {dimension_numbers = #tpu.dot_dimension_numbers<[1], [0], [0], [1], [0, 0, 1, 1], [], []>} : vector<8x32xf32>, vector<32x128xf32>, vector<8x128xf32> -> vector<8x128xf32>
    %88 = arith.addf %86, %87 : vector<8x128xf32>
    %89 = arith.negf %88 : vector<8x128xf32>
    %90 = math.exp %89 : vector<8x128xf32>
    %cst_34 = arith.constant 1.000000e+00 : f32
    %91 = vector.broadcast %cst_34 : f32 to vector<8x128xf32>
    %92 = arith.addf %91, %90 : vector<8x128xf32>
    %93 = arith.divf %91, %92 : vector<8x128xf32>
    %94 = arith.mulf %93, %20 : vector<8x128xf32>
    %95 = arith.addf %94, %23 : vector<8x128xf32>
    %96 = vector.extract_strided_slice %95 {offsets = [0, 0], sizes = [8, 32], strides = [1, 1]} : vector<8x128xf32> to vector<8x32xf32>
    %97 = vector.extract_strided_slice %95 {offsets = [0, 32], sizes = [8, 32], strides = [1, 1]} : vector<8x128xf32> to vector<8x32xf32>
    %98 = vector.extract_strided_slice %95 {offsets = [0, 64], sizes = [8, 32], strides = [1, 1]} : vector<8x128xf32> to vector<8x32xf32>
    %99 = vector.extract_strided_slice %95 {offsets = [0, 96], sizes = [8, 32], strides = [1, 1]} : vector<8x128xf32> to vector<8x32xf32>
    %100 = arith.mulf %97, %77 : vector<8x32xf32>
    %101 = arith.mulf %96, %98 : vector<8x32xf32>
    %102 = arith.addf %100, %101 : vector<8x32xf32>
    %103 = math.tanh %102 : vector<8x32xf32>
    %104 = arith.mulf %99, %103 : vector<8x32xf32>
    %105 = vector.broadcast %c2_i32 : i32 to vector<8x32xi32>
    %106 = arith.cmpi eq, %29, %105 : vector<8x32xi32>
    %107 = arith.select %106, %104, %82 : vector<8x32xi1>, vector<8x32xf32>
    %c3_i32 = arith.constant 3 : i32
    %c8_i32_35 = arith.constant 8 : i32
    %108 = arith.muli %c3_i32, %c8_i32_35 : i32
    %109 = tpu.assume_multiple %108, 8 : i32
    %110 = arith.index_cast %109 : i32 to index
    %c0_36 = arith.constant 0 : index
    %111 = vector.load %arg10[%110, %c0_36] : memref<32x128xf32, #tpu.memory_space<vmem>>, vector<8x128xf32>
    %cst_37 = arith.constant dense<0.000000e+00> : vector<8x128xf32>
    %112 = tpu.matmul %104, %11, %cst_37 {dimension_numbers = #tpu.dot_dimension_numbers<[1], [0], [0], [1], [0, 0, 1, 1], [], []>} : vector<8x32xf32>, vector<32x128xf32>, vector<8x128xf32> -> vector<8x128xf32>
    %113 = arith.addf %111, %112 : vector<8x128xf32>
    %114 = arith.negf %113 : vector<8x128xf32>
    %115 = math.exp %114 : vector<8x128xf32>
    %cst_38 = arith.constant 1.000000e+00 : f32
    %116 = vector.broadcast %cst_38 : f32 to vector<8x128xf32>
    %117 = arith.addf %116, %115 : vector<8x128xf32>
    %118 = arith.divf %116, %117 : vector<8x128xf32>
    %119 = arith.mulf %118, %20 : vector<8x128xf32>
    %120 = arith.addf %119, %23 : vector<8x128xf32>
    %121 = vector.extract_strided_slice %120 {offsets = [0, 0], sizes = [8, 32], strides = [1, 1]} : vector<8x128xf32> to vector<8x32xf32>
    %122 = vector.extract_strided_slice %120 {offsets = [0, 32], sizes = [8, 32], strides = [1, 1]} : vector<8x128xf32> to vector<8x32xf32>
    %123 = vector.extract_strided_slice %120 {offsets = [0, 64], sizes = [8, 32], strides = [1, 1]} : vector<8x128xf32> to vector<8x32xf32>
    %124 = vector.extract_strided_slice %120 {offsets = [0, 96], sizes = [8, 32], strides = [1, 1]} : vector<8x128xf32> to vector<8x32xf32>
    %125 = arith.mulf %122, %102 : vector<8x32xf32>
    %126 = arith.mulf %121, %123 : vector<8x32xf32>
    %127 = arith.addf %125, %126 : vector<8x32xf32>
    %128 = math.tanh %127 : vector<8x32xf32>
    %129 = arith.mulf %124, %128 : vector<8x32xf32>
    %130 = vector.broadcast %c3_i32 : i32 to vector<8x32xi32>
    %131 = arith.cmpi eq, %29, %130 : vector<8x32xi32>
    %132 = arith.select %131, %129, %107 : vector<8x32xi1>, vector<8x32xf32>
    %c4_i32_39 = arith.constant 4 : i32
    %c0_40 = arith.constant 0 : index
    %c0_41 = arith.constant 0 : index
    %133 = vector.load %arg11[%c0_40, %c0_41] : memref<8x32xf32, #tpu.memory_space<vmem>>, vector<8x32xf32>
    tpu.vector_store %arg11[%c0_40, %c0_41], %129 {strides = array<i32>} : memref<8x32xf32, #tpu.memory_space<vmem>>, vector<8x32xf32>,
    %c0_42 = arith.constant 0 : index
    %c0_43 = arith.constant 0 : index
    %134 = vector.load %arg12[%c0_42, %c0_43] : memref<8x32xf32, #tpu.memory_space<vmem>>, vector<8x32xf32>
    tpu.vector_store %arg12[%c0_42, %c0_43], %127 {strides = array<i32>} : memref<8x32xf32, #tpu.memory_space<vmem>>, vector<8x32xf32>,
    %c0_44 = arith.constant 0 : index
    %c0_45 = arith.constant 0 : index
    %135 = vector.load %arg13[%c0_44, %c0_45] : memref<8x32xf32, #tpu.memory_space<vmem>>, vector<8x32xf32>
    tpu.vector_store %arg13[%c0_44, %c0_45], %132 {strides = array<i32>} : memref<8x32xf32, #tpu.memory_space<vmem>>, vector<8x32xf32>,
    %c1_i32_46 = arith.constant 1 : i32
    %136 = arith.cmpi eq, %arg1, %c1_i32_46 : i32
    %137 = arith.extui %136 : i1 to i32
    %c0_i32_47 = arith.constant 0 : i32
    %138 = arith.cmpi ne, %137, %c0_i32_47 : i32
    scf.if %138 {
      %c0_48 = arith.constant 0 : index
      %c0_49 = arith.constant 0 : index
      %139 = vector.load %arg7[%c0_48, %c0_49] : memref<32x2xf32, #tpu.memory_space<vmem>>, vector<32x2xf32>
      %cst_50 = arith.constant dense<0.000000e+00> : vector<8x2xf32>
      %140 = tpu.matmul %132, %139, %cst_50 {dimension_numbers = #tpu.dot_dimension_numbers<[1], [0], [0], [1], [0, 0, 1, 1], [], []>} : vector<8x32xf32>, vector<32x2xf32>, vector<8x2xf32> -> vector<8x2xf32>
      %c0_51 = arith.constant 0 : index
      %c0_52 = arith.constant 0 : index
      %141 = vector.load %arg8[%c0_51, %c0_52] : memref<1x2xf32, #tpu.memory_space<vmem>>, vector<1x2xf32>
      %142 = vector.broadcast %141 : vector<1x2xf32> to vector<8x2xf32>
      %143 = arith.addf %140, %142 : vector<8x2xf32>
      %c0_53 = arith.constant 0 : index
      %c0_54 = arith.constant 0 : index
      %144 = vector.load %arg9[%c0_53, %c0_54] : memref<8x2xf32, #tpu.memory_space<vmem>>, vector<8x2xf32>
      tpu.vector_store %arg9[%c0_53, %c0_54], %143 {strides = array<i32>} : memref<8x2xf32, #tpu.memory_space<vmem>>, vector<8x2xf32>,
    } else {
    }
    return
  }
  func.func @transform_0(%arg0: i32, %arg1: i32) -> (i32, i32, i32) {
    %c0_i32 = arith.constant 0 : i32
    %c0_i32_0 = arith.constant 0 : i32
    return %arg1, %arg0, %c0_i32 : i32, i32, i32
  }
  func.func @transform_1(%arg0: i32, %arg1: i32) -> (i32, i32) {
    %c0_i32 = arith.constant 0 : i32
    %c0_i32_0 = arith.constant 0 : i32
    return %arg0, %c0_i32 : i32, i32
  }
  func.func @transform_2(%arg0: i32, %arg1: i32) -> (i32, i32) {
    %c0_i32 = arith.constant 0 : i32
    %c0_i32_0 = arith.constant 0 : i32
    %c0_i32_1 = arith.constant 0 : i32
    return %c0_i32, %c0_i32_0 : i32, i32
  }
  func.func @transform_3(%arg0: i32, %arg1: i32) -> (i32, i32) {
    %c0_i32 = arith.constant 0 : i32
    %c0_i32_0 = arith.constant 0 : i32
    %c0_i32_1 = arith.constant 0 : i32
    return %c0_i32, %c0_i32_0 : i32, i32
  }
  func.func @transform_4(%arg0: i32, %arg1: i32) -> (i32, i32) {
    %c0_i32 = arith.constant 0 : i32
    %c0_i32_0 = arith.constant 0 : i32
    %c0_i32_1 = arith.constant 0 : i32
    return %c0_i32, %c0_i32_0 : i32, i32
  }
  func.func @transform_5(%arg0: i32, %arg1: i32) -> (i32, i32) {
    %c0_i32 = arith.constant 0 : i32
    %c0_i32_0 = arith.constant 0 : i32
    %c0_i32_1 = arith.constant 0 : i32
    return %c0_i32, %c0_i32_0 : i32, i32
  }
  func.func @transform_6(%arg0: i32, %arg1: i32) -> (i32, i32) {
    %c0_i32 = arith.constant 0 : i32
    %c0_i32_0 = arith.constant 0 : i32
    %c0_i32_1 = arith.constant 0 : i32
    return %c0_i32, %c0_i32_0 : i32, i32
  }
  func.func @transform_7(%arg0: i32, %arg1: i32) -> (i32, i32) {
    %c0_i32 = arith.constant 0 : i32
    %c0_i32_0 = arith.constant 0 : i32
    return %arg0, %c0_i32 : i32, i32
  }
}

</mosaic_0001>

<bundles_post_ra>
// kernel: treelstm_classifier_forward.1
= control target key start
LH: loop header
LB: loop body
LE: loop exit
PB: predicated region body
PF: predicated region fallthrough
CT: control target
= control target key end

     0   :  { %s1366_s24 = smov 0   ;;  %s1368_s25 = smov 0   ;;  %s1542_s0 = inlined_call_operand.vmem [shape: f32[8,8,16], index: 0, kind: input, shape index: {}]   ;;  %s1543_s1 = inlined_call_operand.vmem [shape: s32[8,1], index: 1, kind: input, shape index: {}]   ;;  %s1544_s2 = inlined_call_operand.vmem [shape: f32[16,128], index: 2, kind: input, shape index: {}]   ;;  %s1545_s3 = inlined_call_operand.vmem [shape: f32[32,128], index: 3, kind: input, shape index: {}]   ;;  %s1546_s4 = inlined_call_operand.vmem [shape: f32[1,128], index: 4, kind: input, shape index: {}]   ;;  %s1547_s5 = inlined_call_operand.vmem [shape: f32[32,2], index: 5, kind: input, shape index: {}]   ;;  %s1548_s6 = inlined_call_operand.vmem [shape: f32[1,2], index: 6, kind: input, shape index: {}]   ;;  %s1549_s7 = inlined_call_operand.vmem [shape: f32[8,2], index: 7, kind: output, shape index: {}]  }
   0x1   :  { %s1370_s26 = smov 0  }
   0x2 LB: > { %s26_s27 = sadd.s32 1, %s1308_s25  ;;  %p1074_p0 = scmp.ge.s32.totalorder %s1312_s26, 1  ;;  %s1312_s26 = sphi %s1370_s26, %s17_s26   ;;  %s1308_s25 = sphi %s1368_s25, %s1551_s25   ;;  %s1304_s24 = sphi %s1366_s24, %s1550_s24  }
   0x3   : > { %p27_p1 = scmp.ge.s32.totalorder %s26_s27, 2  ;;  %p264_p2 = scmp.lt.s32.totalorder %s1312_s26, 3 }
   0x5   : > { %s1553_s27 = smov (%p27_p1, %s26_s27), 0  ;;  %p265_p3 = pnand %p1074_p0, %p264_p2 }
   0x6   : > { %s1387_s28 = sshll.u32 (!%p265_p3), %s1304_s24, 2  ;;  %p1077_p5 = scmp.ne.s32.totalorder (!%p265_p3), %s1304_s24, 0 }
   0x7   : > { %268 = sbr.rel (%p265_p3) target bundleno = 3136 (0xc40), region = 48  ;;  %p303_p4 = scmp.lt.s32.totalorder (!%p265_p3), %s1387_s28, 7 }
   0xe   : > { %s304_s29 = scalar_select %p303_p4, %s1387_s28, 7 }
   0xf   : > { %322 = sbr.rel (%p1077_p5) target bundleno = 22 (0x16), region = 52  ;;  %vm323_vm0 = vcmask (!%p1077_p5), 261120   ;;  %v1314_v0 = vmov (!%p1077_p5), 0.0  }
  0x10   : > { %s1076_s30 = sshll.u32 %s304_s29, 3  ;;  %324 = vst.msk [vmem:[#allocation3] sm:$0xff] (!%p1077_p5), %vm323_vm0, %v1314_v0  ;;  %325 = vst.msk [vmem:[#allocation4] sm:$0xff] (!%p1077_p5), %vm323_vm0, %v1314_v0 }
  0x11   : > { %s1394_s10 = scalar_lea.vmem %s1542_s0, %s1076_s30  ;;  %326 = vst.msk [vmem:[#allocation5] sm:$0xff] (!%p1077_p5), %vm323_vm0, %v1314_v0 }
  0x16 PF: > { %v331_v1 = vld [vmem:[%s1544_s2] sm:$0xff]  ;;  %v332_v2 = vld [vmem:[%s1544_s2 + $0x8] sm:$0xff]  ;;  %vm340_vm1 = vcmask 130048   ;;  %v1315_v4 = vmov 0.0|0.0   ;;  %v444_v9 = vld [vmem:[%s1545_s3 + $0x10] sm:$0xff]  ;;  %vm1316_vm2 = vmmov 0   ;;  %v446_v23 = vlaneseq }
  0x17   : > { %v442_v3 = vld [vmem:[%s1545_s3] sm:$0xff]  ;;  %1198 = vmatprep.subr.bf16.mxu1 %v1315_v4  ;;  %v1194_v5 = vpack.c.bf16 %v332_v2, %v331_v1  ;;  %v443_v6 = vld [vmem:[%s1545_s3 + $0x8] sm:$0xff]  ;;  %v445_v10 = vld [vmem:[%s1545_s3 + $0x18] sm:$0xff]  ;;  %v1317_v11 = vmov 0.0   ;;  %vm464_vm3 = vcmask 261120   ;;  %v1318_v27 = vmov 1.0  }
  0x18   : > { %v327_v7 = vld [vmem:[%s1394_s10] sm:$0xff]  ;;  %v1411_v8 = vpack.c.bf16 %v443_v6, %v442_v3  ;;  %1147 = vmatprep.mubr.msk.f32.mxu1 %vm1316_vm2, %v1317_v11  ;;  %v328_v12 = vld [vmem:[%s1394_s10 + $0x8] sm:$0xff]  ;;  %v1424_v13 = vpack.c.bf16 %v445_v10, %v444_v9  ;;  %v447_v26 = vand.u32 127, %v446_v23  ;;  %s1319_s30 = smov 64   ;;  %s1320_s8 = smov 32   ;;  %v329_v40 = vld [vmem:[%s1394_s10 + $0x10] sm:$0xff] }
  0x19   : > { %1133 = vmatprep.mubr.msk.f32.mxu0 %vm340_vm1, %v327_v7  ;;  %1195 = vmatprep.subr.bf16.mxu0 %v1194_v5  ;;  %v460_v14 = vld [vmem:[#allocation3] sm:$0xff]  ;;  %v461_v33 = vld [vmem:[#allocation4] sm:$0xff]  ;;  %v330_v41 = vld [vmem:[%s1394_s10 + $0x18] sm:$0xff]  ;;  %v1321_v23 = vmov 0   ;;  %s1322_s11 = smov 96   ;;  %p1092_p6 = scmp.ne.s32.totalorder %s1304_s24, 1 }
  0x1a   : > { %1200 = vmatpush3.bf16.msra.mxu1 %v1411_v8  ;;  %1197 = vmatpush3.bf16.msra.mxu0 %v1194_v5  ;;  %v1444_v15 = vld [vmem:[%s1546_s4] ss:$0 sm:$0xff]  ;;  %vm448_vm4 = vcmp.ge.s32.totalorder %v447_v26, 64  ;;  %vm449_vm5 = vcmp.lt.s32.totalorder %v447_v26, 96  ;;  %vm1324_vm11 = vmmov (!%p1092_p6), 0   ;;  %vm991_vm12 = vcmask (!%p1092_p6), 15360  }
  0x1b   : > { %1201 = vmatprep.subr.bf16.mxu1 %v1315_v4  ;;  %1204 = vmatprep.subr.bf16.mxu0 %v1315_v4  ;;  %vm450_vm6 = vmand %vm448_vm4, %vm449_vm5 }
  0x1c   : > { %v1447_v28 = vsel %vm450_vm6, 2.0, %v1318_v27  ;;  %v1450_v30 = vsel %vm450_vm6, -1.0, %v1317_v11  ;;  %1264 = vset.pattern.permute.xlu1 %v1321_v23  ;;  %1265 = vset.pattern.permute.xlu0 %v1321_v23 }
  0x1d   : > { %1134 = vmatmul.mubr.msk.f32.vlgmr.msra.gmra.mrb[0].mxu0 %vm340_vm1, %v328_v12 }
  0x1e   : > { %1203 = vmatpush3.bf16.msra.mxu1 %v1424_v13  ;;  %1206 = vmatpush3.bf16.msra.mxu0 %v1411_v8 }
  0x1f   : > { %1207 = vmatprep.subr.bf16.mxu0 %v1315_v4  ;;  %1210 = vmatprep.subr.bf16.mxu1 %v1315_v4 }
  0x20   : > { %1136 = vmatprep.mubr.msk.f32.mxu0 %vm340_vm1, %v329_v40 }
  0x21   : > { %1148 = vmatmul.mubr.msk.f32.vlgmr.msra.gmra.mrb[0].mxu1 %vm464_vm3, %v460_v14  ;;  %1137 = vmatmul.mubr.msk.f32.gmra.mrb[2].mxu0 %vm340_vm1, %v330_v41  ;;  %v458_v41 = vstv %s1387_s28 }
  0x22   : > { %1209 = vmatpush3.bf16.msra.mxu0 %v1424_v13  ;;  %1212 = vmatpush3.bf16.msra.mxu1 %v1411_v8 }
  0x23   : > { %1213 = vmatprep.subr.bf16.mxu1 %v1315_v4  ;;  %1169 = vmatprep.mubr.msk.f32.mxu1 %vm1316_vm2, %v1317_v11 }
  0x24   : > { %1216 = vmatprep.subr.bf16.mxu0 %v1315_v4  ;;  %1158 = vmatprep.mubr.msk.f32.mxu0 %vm1316_vm2, %v1317_v11 }
  0x26   : > { %1215 = vmatpush3.bf16.msra.mxu1 %v1424_v13 }
  0xf0   : > { %v1135_v16 = vpop.f32.mrb[0].mxu0 }
  0xf1   : > { %v419_v17 = vpop.f32.mrb[1].mxu0  ;;  %v425_v48 = vadd.f32 %v1135_v16, %v1444_v15 }
  0xf2   : > { %v420_v18 = vadd.f32 %v1444_v15, %v419_v17 }
  0xf4   : > { %v534_v19 = vpop.f32.mrb[0].mxu1  ;;  %v1468_v45 = vpop.f32.mrb[2].mxu0 }
  0xf5   : > { %v538_v20 = vadd.f32 %v534_v19, %v420_v18  ;;  %v1149_v21 = vpop.f32.mrb[1].mxu1  ;;  %v429_v46 = vpop.f32.mrb[3].mxu0 }
  0xf6   : > { %v430_v3 = vadd.f32 %v1444_v15, %v429_v46 }
  0xf7   : > { %v1085_v22 = vmul.f32 -1.442695, %v538_v20 }
  0xf9   : > { %1266 = vpow2.f32 %v1085_v22 }
 0x103   : > { %v1267_v24 = vpop.eup %1266 }
 0x104   : > { %v542_v25 = vadd.f32 1.0, %v1267_v24  ;;  %v435_v24 = vadd.f32 %v1468_v45, %v1444_v15  ;;  %v453_v15 = vld [vmem:[%s1543_s1] sm:$0xff] }
 0x106   : > { %1268 = vrcp.f32 %v542_v25 }
 0x110   : > { %v1269_v29 = vpop.eup %1268 }
 0x111   : > { %v545_v31 = vmul.f32 %v1269_v29, %v1447_v28 }
 0x113   : > { %v546_v32 = vadd.f32 %v545_v31, %v1450_v30 }
 0x115   : > { %553 = vrot.lane.b32.xlu0 %v546_v32, %s1319_s30 }
 0x119   : > { %548 = vrot.lane.b32.xlu0 %v461_v33, %s1320_s8 }
 0x187   : > { %v554_v34 = vpop.permute.xlu0 %553 }
 0x188   : > { %v556_v35 = vmul.f32 %v554_v34, %v546_v32 }
 0x18a   : > { %558 = vrot.lane.b32.xlu1 %v556_v35, %s1320_s8 }
 0x18b   : > { %v549_v36 = vpop.permute.xlu0 %548 }
 0x18c   : > { %v551_v37 = vmul.f32 %v549_v36, %v546_v32 }
 0x1fc   : > { %v559_v38 = vpop.permute.xlu1 %558 }
 0x1fd   : > { %v561_v39 = vadd.f32 %v559_v38, %v551_v37  ;;  %v462_v38 = vld [vmem:[#allocation5] sm:$0xff] }
 0x1ff   : > { %1270 = vtanh.f32 %v561_v39 }
 0x209   : > { %v1271_v42 = vpop.eup %1270 }
 0x20a   : > { %564 = vrot.lane.b32.xlu1 %v1271_v42, %s1319_s30 }
 0x27c   : > { %v565_v43 = vpop.permute.xlu1 %564 }
 0x27d   : > { %v1464_v44 = vmul.f32 %v565_v43, %v546_v32 }
 0x27f   : > { %577 = vrot.lane.b32.xlu0 %v1464_v44, %s1320_s8 }
 0x2f1   : > { %v578_v47 = vpop.permute.xlu0 %577 }
 0x2f2   : > { %1159 = vmatmul.mubr.msk.f32.vlgmr.msra.gmra.mrb[4].mxu0 %vm464_vm3, %v578_v47 }
 0x2f3   : > { %1218 = vmatpush3.bf16.msra.mxu0 %v1411_v8  ;;  %1180 = vmatprep.mubr.msk.f32.mxu0 %vm1316_vm2, %v1317_v11 }
 0x2f4   : > { %1219 = vmatprep.subr.bf16.mxu0 %v1315_v4 }
 0x2f7   : > { %1221 = vmatpush3.bf16.msra.mxu0 %v1424_v13 }
 0x3c5   : > { %v647_v49 = vpop.f32.mrb[4].mxu0 }
 0x3c6   : > { %v651_v50 = vadd.f32 %v647_v49, %v425_v48  ;;  %v1160_v51 = vpop.f32.mrb[5].mxu0 }
 0x3c8   : > { %v1087_v52 = vmul.f32 -1.442695, %v651_v50 }
 0x3ca   : > { %1272 = vpow2.f32 %v1087_v52 }
 0x3d4   : > { %v1273_v53 = vpop.eup %1272 }
 0x3d5   : > { %v655_v54 = vadd.f32 1.0, %v1273_v53 }
 0x3d7   : > { %1274 = vrcp.f32 %v655_v54  ;;  %v908_v54 = vld [vmem:[%s1547_s5] sm:$0xff] (!%p1092_p6) }
 0x3e1   : > { %v1275_v55 = vpop.eup %1274 }
 0x3e2   : > { %v658_v56 = vmul.f32 %v1275_v55, %v1447_v28  ;;  %v909_v55 = vld [vmem:[%s1547_s5 + $0x8] sm:$0xff] (!%p1092_p6) }
 0x3e4   : > { %v659_v57 = vadd.f32 %v658_v56, %v1450_v30  ;;  %v910_v56 = vld [vmem:[%s1547_s5 + $0x10] sm:$0xff] (!%p1092_p6) }
 0x3e6   : > { %662 = vrot.lane.b32.xlu1 %v659_v57, %s1319_s30  ;;  %v660_v60 = vmul.f32 %v659_v57, %v561_v39 }
 0x458   : > { %v663_v58 = vpop.permute.xlu1 %662 }
 0x459   : > { %v665_v59 = vmul.f32 %v663_v58, %v659_v57  ;;  %v1223_v58 = vpack.c.bf16 (!%p1092_p6), %v909_v55, %v908_v54 }
 0x45b   : > { %667 = vrot.lane.b32.xlu0 %v665_v59, %s1320_s8  ;;  %v911_v59 = vld [vmem:[%s1547_s5 + $0x18] sm:$0xff] (!%p1092_p6) }
 0x4cd   : > { %v668_v61 = vpop.permute.xlu0 %667 }
 0x4ce   : > { %v670_v62 = vadd.f32 %v668_v61, %v660_v60  ;;  %v1325_v60 = vmov (!%p1092_p6), 0.0   ;;  %v1226_v61 = vpack.c.bf16 (!%p1092_p6), %v911_v59, %v910_v56 }
 0x4d0   : > { %1276 = vtanh.f32 %v670_v62 }
 0x4da   : > { %v1277_v63 = vpop.eup %1276 }
 0x4db   : > { %673 = vrot.lane.b32.xlu1 %v1277_v63, %s1319_s30 }
 0x54d   : > { %v674_v0 = vpop.permute.xlu1 %673 }
 0x54e   : > { %v1482_v1 = vmul.f32 %v674_v0, %v659_v57  ;;  %v1323_v57 = vmov (!%p1092_p6), 0.0|0.0  }
 0x54f   : > { %1222 = vmatprep.subr.bf16.mxu0 (!%p1092_p6), %v1323_v57 }
 0x550   : > { %682 = vrot.lane.b32.xlu0 %v1482_v1, %s1320_s8 }
 0x5c2   : > { %v683_v2 = vpop.permute.xlu0 %682 }
 0x5c3   : > { %1170 = vmatmul.mubr.msk.f32.vlgmr.msra.gmra.mrb[2].mxu1 %vm464_vm3, %v683_v2 }
 0x696   : > { %v752_v4 = vpop.f32.mrb[2].mxu1 }
 0x697   : > { %v756_v5 = vadd.f32 %v752_v4, %v430_v3  ;;  %v1171_v6 = vpop.f32.mrb[3].mxu1 }
 0x699   : > { %v1089_v7 = vmul.f32 -1.442695, %v756_v5 }
 0x69b   : > { %1278 = vpow2.f32 %v1089_v7 }
 0x6a5   : > { %v1279_v8 = vpop.eup %1278 }
 0x6a6   : > { %v760_v9 = vadd.f32 1.0, %v1279_v8 }
 0x6a8   : > { %1280 = vrcp.f32 %v760_v9 }
 0x6b2   : > { %v1281_v10 = vpop.eup %1280 }
 0x6b3   : > { %v763_v11 = vmul.f32 %v1281_v10, %v1447_v28 }
 0x6b5   : > { %v764_v12 = vadd.f32 %v763_v11, %v1450_v30 }
 0x6b7   : > { %767 = vrot.lane.b32.xlu1 %v764_v12, %s1319_s30  ;;  %v765_v16 = vmul.f32 %v764_v12, %v670_v62  ;;  %v1093_v62 = vld [vmem:[%s1548_s6] ss:$0 sm:$0xff] (!%p1092_p6) }
 0x729   : > { %v768_v13 = vpop.permute.xlu1 %767 }
 0x72a   : > { %v770_v14 = vmul.f32 %v768_v13, %v764_v12 }
 0x72c   : > { %772 = vrot.lane.b32.xlu0 %v770_v14, %s1320_s8 }
 0x79e   : > { %v773_v17 = vpop.permute.xlu0 %772 }
 0x79f   : > { %v775_v18 = vadd.f32 %v773_v17, %v765_v16 }
 0x7a1   : > { %1282 = vtanh.f32 %v775_v18 }
 0x7ab   : > { %v1283_v19 = vpop.eup %1282 }
 0x7ac   : > { %778 = vrot.lane.b32.xlu1 %v1283_v19, %s1319_s30 }
 0x81e   : > { %v779_v20 = vpop.permute.xlu1 %778 }
 0x81f   : > { %v781_v21 = vmul.f32 %v779_v20, %v764_v12 }
 0x821   : > { %787 = vrot.lane.b32.xlu0 %v781_v21, %s1320_s8 }
 0x893   : > { %v788_v22 = vpop.permute.xlu0 %787 }
 0x894   : > { %1181 = vmatmul.mubr.msk.f32.vlgmr.msra.gmra.mrb[6].mxu0 %vm464_vm3, %v788_v22 }
 0x895   : > { %1191 = vmatprep.mubr.msk.f32.mxu0 (!%p1092_p6), %vm1324_vm11, %v1325_v60  ;;  %1224 = vmatpush3.bf16.msra.mxu0 (!%p1092_p6), %v1223_v58 }
 0x896   : > { %1225 = vmatprep.subr.bf16.mxu0 (!%p1092_p6), %v1323_v57 }
 0x899   : > { %1227 = vmatpush3.bf16.msra.mxu0 (!%p1092_p6), %v1226_v61 }
 0x967   : > { %v857_v25 = vpop.f32.mrb[6].mxu0 }
 0x968   : > { %v861_v26 = vadd.f32 %v857_v25, %v435_v24  ;;  %v1182_v27 = vpop.f32.mrb[7].mxu0 }
 0x96a   : > { %v1091_v29 = vmul.f32 -1.442695, %v861_v26 }
 0x96c   : > { %1284 = vpow2.f32 %v1091_v29 }
 0x976   : > { %v1285_v31 = vpop.eup %1284 }
 0x977   : > { %v865_v32 = vadd.f32 1.0, %v1285_v31 }
 0x979   : > { %1286 = vrcp.f32 %v865_v32 }
 0x983   : > { %v1287_v33 = vpop.eup %1286 }
 0x984   : > { %v868_v34 = vmul.f32 %v1287_v33, %v1447_v28 }
 0x986   : > { %v869_v35 = vadd.f32 %v868_v34, %v1450_v30 }
 0x988   : > { %872 = vrot.lane.b32.xlu1 %v869_v35, %s1319_s30  ;;  %v870_v39 = vmul.f32 %v869_v35, %v775_v18 }
 0x98c   : > { %455 = vperm.xlu1 %1264, %v453_v15  }
 0x9fa   : > { %v873_v36 = vpop.permute.xlu1 %872 }
 0x9fb   : > { %v875_v37 = vmul.f32 %v873_v36, %v869_v35 }
 0x9fd   : > { %877 = vrot.lane.b32.xlu0 %v875_v37, %s1320_s8 }
 0xa01   : > { %570 = vrot.lane.b32.xlu0 %v462_v38, %s1322_s11 }
 0xa0b   : > { %v456_v42 = vpop.permute.xlu1 %455 }
 0xa0c   : > { %v459_v43 = vsub.s32 %v456_v42, %v458_v41 }
 0xa0e   : > { %vm568_vm7 = vcmp.eq.s32.totalorder %v459_v43, 0  ;;  %vm677_vm8 = vcmp.eq.s32.totalorder %v459_v43, 1  ;;  %vm782_vm9 = vcmp.eq.s32.totalorder %v459_v43, 2  ;;  %vm887_vm10 = vcmp.eq.s32.totalorder %v459_v43, 3 }
 0xa6f   : > { %v878_v40 = vpop.permute.xlu0 %877 }
 0xa70   : > { %v880_v28 = vadd.f32 %v878_v40, %v870_v39 }
 0xa72   : > { %1288 = vtanh.f32 %v880_v28 }
 0xa73   : > { %v571_v45 = vpop.permute.xlu0 %570 }
 0xa74   : > { %v573_v46 = vsel %vm568_vm7, %v1464_v44, %v571_v45 }
 0xa75   : > { %v678_v49 = vsel %vm677_vm8, %v1482_v1, %v573_v46 }
 0xa76   : > { %v783_v51 = vsel %vm782_vm9, %v781_v21, %v678_v49 }
 0xa7c   : > { %v1289_v30 = vpop.eup %1288 }
 0xa7d   : > { %883 = vrot.lane.b32.xlu1 %v1289_v30, %s1319_s30 }
 0xa81   : > { %895 = vrot.lane.b32.xlu1 %v880_v28, %s1322_s11 }
 0xaef   : > { %v884_v47 = vpop.permute.xlu1 %883 }
 0xaf0   : > { %v886_v48 = vmul.f32 %v884_v47, %v869_v35 }
 0xaf2   : > { %890 = vrot.lane.b32.xlu0 %v886_v48, %s1320_s8  ;;  %v888_v52 = vsel %vm887_vm10, %v886_v48, %v783_v51 }
 0xaf3   : > { %v896_v50 = vpop.permute.xlu1 %895 }
 0xaf4   : > { %898 = vst.msk [vmem:[#allocation4] sm:$0xff] %vm464_vm3, %v896_v50 }
 0xaf6   : > { %900 = vrot.lane.b32.xlu0 %v888_v52, %s1320_s8 }
 0xb63   : > { %907 = sbr.rel (%p1092_p6) target bundleno = 3136 (0xc40), region = 56 }
 0xb64   : > { %v891_v53 = vpop.permute.xlu0 %890 }
 0xb65   : > { %893 = vst.msk [vmem:[#allocation3] sm:$0xff] %vm464_vm3, %v891_v53 }
 0xb68   : > { %v901_v44 = vpop.permute.xlu0 %900 }
 0xb69   : > { %903 = vst.msk [vmem:[#allocation5] sm:$0xff] %vm464_vm3, %v901_v44  ;;  %1192 = vmatmul.mubr.msk.f32.vlgmr.msra.gmra.mrb[0].mxu0 (!%p1092_p6), %vm464_vm3, %v901_v44 }
 0xc3c   : > { %v987_v63 = vpop.f32.mrb[0].mxu0 }
 0xc3d   : > { %v988_v0 = vadd.f32 %v1093_v62, %v987_v63  ;;  %v1193_v1 = vpop.f32.mrb[1].mxu0 }
 0xc3f   : > { %992 = vst.msk [vmem:[%s1549_s7] sm:$0xff] %vm991_vm12, %v988_v0 }
 0xc40 PF: > { %s17_s26 = sadd.s32 1, %s1312_s26   ;;  %s1550_s24 = smov %s1308_s25 }
 0xc41   : > { %p14_p7 = scmp.ge.s32.totalorder %s17_s26, 4   ;;  %s1551_s25 = smov %s1553_s27 }
 0xc43   :  { %16 = sbr.rel (!%p14_p7) target bundleno = 2 (0x2), region = 92 }

</bundles_post_ra>
